<compile_context>
chip_gen: v6e
topology: v6e:2x2x1
jax: 0.10.0
libtpu: 0.0.40
codegen_flags: <defaults>
</compile_context>

<pallas_src>
import math

import jax
import jax.numpy as jnp
from jax import lax
from jax.experimental import pallas as pl
from jax.experimental.pallas import tpu as pltpu

_INV_SQRT2 = 1.0 / math.sqrt(2.0)


def _gcn_kernel(adj_ref, xw_ref, b_ref, o_ref, acc_ref):
    # adj_ref: (TM, TK)    row/contraction tile of the (padded) adjacency
    # xw_ref : (TK, BF)    batch-folded x @ W^T tile   (BF = B * F_pad)
    # b_ref  : (1, BF)     batch-tiled, lane-padded bias (f32)
    # o_ref  : (TM, BF)    batch-folded output tile
    # acc_ref: (TM, BF)    f32 accumulator for adj @ xW
    k = pl.program_id(1)

    @pl.when(k == 0)
    def _():
        acc_ref[...] = jnp.zeros_like(acc_ref)

    # Graph aggregation (reassociated): accumulate adj @ (x @ W^T).
    acc_ref[...] += jnp.dot(adj_ref[...], xw_ref[...],
                            preferred_element_type=jnp.float32)

    @pl.when(k == pl.num_programs(1) - 1)
    def _():
        y = acc_ref[...] + b_ref[...]
        # Exact GELU (matches torch.nn.functional.gelu default, erf-based).
        y = 0.5 * y * (1.0 + lax.erf(y * _INV_SQRT2))
        # TODO(synk): nn.Dropout is identity in eval mode; training-mode
        # dropout (pltpu.prng_seed / prng_random_bits) intentionally omitted.
        o_ref[...] = y.astype(o_ref.dtype)


def _round_up(x, m):
    return ((x + m - 1) // m) * m


def _largest_divisor_tile(n, preferred, quantum):
    """Largest t <= preferred with n % t == 0 and t % quantum == 0, else None."""
    t = (preferred // quantum) * quantum
    while t >= quantum:
        if n % t == 0:
            return t
        t -= quantum
    return None


def _choose_node_tiling(n, tm_pref=512, tk_pref=1024):
    """Return (n_pad, tm, tk) with n_pad % tm == 0 and n_pad % tk == 0."""
    if n <= tm_pref:
        # Single full-extent tile on both node axes (block == array dim, so the
        # (8,128) divisibility rule does not apply).
        return n, n, n
    tm = _largest_divisor_tile(n, tm_pref, 8)
    tk = _largest_divisor_tile(n, tk_pref, 128)
    if tm is not None and tk is not None:
        return n, tm, tk
    # Awkward N (e.g. prime): zero-pad N to a tileable size instead of falling
    # back to a full-N VMEM tile (which would blow VMEM for large N).
    n_pad = _round_up(n, tm_pref)
    tk = tk_pref if n_pad % tk_pref == 0 else tm_pref
    return n_pad, tm_pref, tk


def gcn_layer(x, adj, weight, bias, *, use_bf16=False):
    """x: (B, N, F_in), adj: (N, N), weight: (F_out, F_in), bias: (F_out,)."""
    B, N, F_in = x.shape
    F_out = weight.shape[0]
    out_dtype = x.dtype

    # --- Reassociation: Conv1d(k=1) is a pointwise linear, so
    #       (adj @ x) @ W^T + b == adj @ (x @ W^T) + b.
    # The small x @ W^T matmul runs once in XLA; the Pallas kernel only does
    # the dominant N x N aggregation fused with bias + GELU.
    # (If F_out >> F_in one could keep the original order; for typical GCN
    # shapes the folded/reassociated form wins on adj HBM traffic regardless.)
    xw = jnp.einsum("bnf,of->bno", x, weight,
                    precision=lax.Precision.HIGHEST)           # (B, N, F_out)

    # --- Lane-dense padding: pad F_out so B * F_pad is a multiple of 128
    # (unmasked vst).  Padded columns stay exactly zero and are sliced off.
    lane_quant = 128 // math.gcd(B, 128)
    F_pad = _round_up(F_out, lane_quant)
    if F_pad != F_out:
        xw = jnp.pad(xw, ((0, 0), (0, 0), (0, F_pad - F_out)))
        bias_p = jnp.pad(bias, (0, F_pad - F_out))
    else:
        bias_p = bias
    BF = B * F_pad

    # --- Batch folding: the batch lives on the lane axis so the adjacency is
    # streamed from HBM exactly once (not once per batch element).
    xw_f = jnp.transpose(xw, (1, 0, 2)).reshape(N, BF)          # (N, B*F_pad)
    bias_f = jnp.tile(bias_p, (B,)).reshape(1, BF).astype(jnp.float32)

    # --- Node tiling (pads awkward N instead of using a full-N VMEM tile).
    N_pad, TM, TK = _choose_node_tiling(N)
    if N_pad != N:
        adj = jnp.pad(adj, ((0, N_pad - N), (0, N_pad - N)))
        xw_f = jnp.pad(xw_f, ((0, N_pad - N), (0, 0)))

    in_dtype = jnp.bfloat16 if use_bf16 else jnp.float32
    adj_k = adj.astype(in_dtype)
    xw_k = xw_f.astype(in_dtype)
    in_bytes = jnp.dtype(in_dtype).itemsize
    out_bytes = jnp.dtype(out_dtype).itemsize

    # --- Explicit VMEM budgeting (double-buffered inputs/output + f32 acc);
    # keeps the config comfortably inside v7x's 64 MiB physical VMEM.
    def vmem_bytes(tm, tk):
        return (2 * tm * tk * in_bytes + 2 * tk * BF * in_bytes
                + 2 * BF * 4 + 2 * tm * BF * out_bytes + tm * BF * 4)

    if N_pad > TM:  # only shrink in the tiled regime (tiles stay divisors)
        budget = 40 << 20
        while vmem_bytes(TM, TK) > budget and TK >= 256:
            TK //= 2
        while vmem_bytes(TM, TK) > budget and TM >= 32 and TM % 16 == 0:
            TM //= 2
    vmem_limit = int(min(max(vmem_bytes(TM, TK) + (4 << 20), 16 << 20),
                         100 << 20))

    # Note (v7x): a parallel extent (N_pad // TM) >= 2 lets both TensorCores
    # take balanced shards; for tiny demo N the grid degenerates to (1, 1).
    grid = (N_pad // TM, N_pad // TK)

    # Cost estimate reflecting the real blocking: adj read once, xW re-read
    # once per row tile, bias per step, output written once.
    flops = 2 * N_pad * N_pad * BF
    bytes_accessed = (N_pad * N_pad * in_bytes
                      + grid[0] * N_pad * BF * in_bytes
                      + grid[0] * grid[1] * BF * 4
                      + N_pad * BF * out_bytes)

    out_folded = pl.pallas_call(
        _gcn_kernel,
        out_shape=jax.ShapeDtypeStruct((N_pad, BF), out_dtype),
        grid_spec=pltpu.PrefetchScalarGridSpec(
            num_scalar_prefetch=0,
            grid=grid,
            in_specs=[
                pl.BlockSpec((TM, TK), lambda i, k: (i, k)),   # adj tile
                pl.BlockSpec((TK, BF), lambda i, k: (k, 0)),   # folded x @ W^T
                pl.BlockSpec((1, BF), lambda i, k: (0, 0)),    # folded bias
            ],
            out_specs=pl.BlockSpec((TM, BF), lambda i, k: (i, 0)),
            scratch_shapes=[pltpu.VMEM((TM, BF), jnp.float32)],
        ),
        compiler_params=pltpu.CompilerParams(
            dimension_semantics=("parallel", "arbitrary"),
            vmem_limit_bytes=vmem_limit),
        cost_estimate=pl.CostEstimate(
            flops=flops,
            transcendentals=N_pad * BF,
            bytes_accessed=bytes_accessed),
    )(adj_k, xw_k, bias_f)

    # De-fold: (N_pad, B*F_pad) -> (B, N, F_out).  The row/feature slices fuse
    # into this transpose, so there is no extra HBM round trip beyond the
    # unavoidable un-fold.
    out = out_folded[:N].reshape(N, B, F_pad).transpose(1, 0, 2)[:, :, :F_out]
    return out


def gcn_layer_ref(x, adj, weight, bias):
    """Pure-JAX reference mirroring the PyTorch forward (eval mode, same order)."""
    h = jnp.einsum("nm,bmf->bnf", adj, x, precision=lax.Precision.HIGHEST)
    h = jnp.einsum("bnf,of->bno", h, weight,
                   precision=lax.Precision.HIGHEST) + bias
    return 0.5 * h * (1.0 + lax.erf(h * _INV_SQRT2))


if __name__ == "__main__":
    # Small shapes: batch=2, nodes=16, in_features=32, out_features=32
    B, N, F_in, F_out = 2, 16, 32, 32

    key = jax.random.PRNGKey(0)
    kx, kadj, kw, kb = jax.random.split(key, 4)

    x = jax.random.normal(kx, (B, N, F_in), dtype=jnp.float32)
    adj = jax.random.uniform(kadj, (N, N), dtype=jnp.float32)

    # Deterministic Conv1d(k=1) parameter init (Kaiming-uniform-like bounds).
    bound = 1.0 / math.sqrt(F_in)
    weight = jax.random.uniform(kw, (F_out, F_in), dtype=jnp.float32,
                                minval=-bound, maxval=bound)
    bias = jax.random.uniform(kb, (F_out,), dtype=jnp.float32,
                              minval=-bound, maxval=bound)

    out = gcn_layer(x, adj, weight, bias)
    out = jax.block_until_ready(out)

    ref = gcn_layer_ref(x, adj, weight, bias)
    assert out.shape == (B, N, F_out)
    assert jnp.allclose(out, ref, atol=1e-4, rtol=1e-4)

    print("KERNEL_OK")
</pallas_src>

<mosaic_0001>
module attributes {stable_mosaic.version = 11 : i64} {
  func.func @_gcn_kernel(%arg0: i32, %arg1: i32, %arg2: memref<16x16xf32, #tpu.memory_space<vmem>>, %arg3: memref<16x128xf32, #tpu.memory_space<vmem>>, %arg4: memref<1x128xf32, #tpu.memory_space<vmem>>, %arg5: memref<16x128xf32, #tpu.memory_space<vmem>>, %arg6: memref<16x128xf32, #tpu.memory_space<vmem>>) attributes {dimension_semantics = [#tpu.dimension_semantics<parallel>, #tpu.dimension_semantics<arbitrary>], iteration_bounds = array<i64: 1, 1>, scalar_prefetch = 0 : i64, scratch_operands = 1 : i64, tpu.core_type = #tpu.core_type<tc>, window_params = [{transform_indices = @transform_0, window_bounds = array<i64: 16, 16>}, {transform_indices = @transform_1, window_bounds = array<i64: 16, 128>}, {pipeline_mode = #tpu.pipeline_mode<synchronous>, transform_indices = @transform_2, window_bounds = array<i64: 1, 128>}, {transform_indices = @transform_3, window_bounds = array<i64: 16, 128>}]} {
    %c0_i32 = arith.constant 0 : i32
    %0 = arith.cmpi eq, %arg1, %c0_i32 : i32
    %1 = arith.extui %0 : i1 to i32
    %c0_i32_0 = arith.constant 0 : i32
    %2 = arith.cmpi ne, %1, %c0_i32_0 : i32
    scf.if %2 {
      %cst_10 = arith.constant 0.000000e+00 : f32
      %12 = vector.broadcast %cst_10 : f32 to vector<16x128xf32>
      %c0_11 = arith.constant 0 : index
      %c0_12 = arith.constant 0 : index
      %13 = vector.load %arg6[%c0_11, %c0_12] : memref<16x128xf32, #tpu.memory_space<vmem>>, vector<16x128xf32>
      tpu.vector_store %arg6[%c0_11, %c0_12], %12 {strides = array<i32>} : memref<16x128xf32, #tpu.memory_space<vmem>>, vector<16x128xf32>,
    } else {
    }
    %c0 = arith.constant 0 : index
    %c0_1 = arith.constant 0 : index
    %3 = vector.load %arg6[%c0, %c0_1] : memref<16x128xf32, #tpu.memory_space<vmem>>, vector<16x128xf32>
    %c0_2 = arith.constant 0 : index
    %c0_3 = arith.constant 0 : index
    %4 = vector.load %arg2[%c0_2, %c0_3] : memref<16x16xf32, #tpu.memory_space<vmem>>, vector<16x16xf32>
    %c0_4 = arith.constant 0 : index
    %c0_5 = arith.constant 0 : index
    %5 = vector.load %arg3[%c0_4, %c0_5] : memref<16x128xf32, #tpu.memory_space<vmem>>, vector<16x128xf32>
    %cst = arith.constant dense<0.000000e+00> : vector<16x128xf32>
    %6 = tpu.matmul %4, %5, %cst {dimension_numbers = #tpu.dot_dimension_numbers<[1], [0], [0], [1], [0, 0, 1, 1], [], []>} : vector<16x16xf32>, vector<16x128xf32>, vector<16x128xf32> -> vector<16x128xf32>
    %7 = arith.addf %3, %6 : vector<16x128xf32>
    %c0_6 = arith.constant 0 : index
    %c0_7 = arith.constant 0 : index
    %8 = vector.load %arg6[%c0_6, %c0_7] : memref<16x128xf32, #tpu.memory_space<vmem>>, vector<16x128xf32>
    tpu.vector_store %arg6[%c0_6, %c0_7], %7 {strides = array<i32>} : memref<16x128xf32, #tpu.memory_space<vmem>>, vector<16x128xf32>,
    %c0_i32_8 = arith.constant 0 : i32
    %9 = arith.cmpi eq, %arg1, %c0_i32_8 : i32
    %10 = arith.extui %9 : i1 to i32
    %c0_i32_9 = arith.constant 0 : i32
    %11 = arith.cmpi ne, %10, %c0_i32_9 : i32
    scf.if %11 {
      %c0_10 = arith.constant 0 : index
      %c0_11 = arith.constant 0 : index
      %12 = vector.load %arg6[%c0_10, %c0_11] : memref<16x128xf32, #tpu.memory_space<vmem>>, vector<16x128xf32>
      %c0_12 = arith.constant 0 : index
      %c0_13 = arith.constant 0 : index
      %13 = vector.load %arg4[%c0_12, %c0_13] : memref<1x128xf32, #tpu.memory_space<vmem>>, vector<1x128xf32>
      %14 = vector.broadcast %13 : vector<1x128xf32> to vector<16x128xf32>
      %15 = arith.addf %12, %14 : vector<16x128xf32>
      %cst_14 = arith.constant 5.000000e-01 : f32
      %16 = vector.broadcast %cst_14 : f32 to vector<16x128xf32>
      %17 = arith.mulf %16, %15 : vector<16x128xf32>
      %cst_15 = arith.constant 0.707106769 : f32
      %18 = vector.broadcast %cst_15 : f32 to vector<16x128xf32>
      %19 = arith.mulf %15, %18 : vector<16x128xf32>
      %20 = math.erf %19 : vector<16x128xf32>
      %cst_16 = arith.constant 1.000000e+00 : f32
      %21 = vector.broadcast %cst_16 : f32 to vector<16x128xf32>
      %22 = arith.addf %21, %20 : vector<16x128xf32>
      %23 = arith.mulf %17, %22 : vector<16x128xf32>
      %c0_17 = arith.constant 0 : index
      %c0_18 = arith.constant 0 : index
      %24 = vector.load %arg5[%c0_17, %c0_18] : memref<16x128xf32, #tpu.memory_space<vmem>>, vector<16x128xf32>
      tpu.vector_store %arg5[%c0_17, %c0_18], %23 {strides = array<i32>} : memref<16x128xf32, #tpu.memory_space<vmem>>, vector<16x128xf32>,
    } else {
    }
    return
  }
  func.func @transform_0(%arg0: i32, %arg1: i32) -> (i32, i32) {
    %c0_i32 = arith.constant 0 : i32
    return %arg0, %arg1 : i32, i32
  }
  func.func @transform_1(%arg0: i32, %arg1: i32) -> (i32, i32) {
    %c0_i32 = arith.constant 0 : i32
    %c0_i32_0 = arith.constant 0 : i32
    return %arg1, %c0_i32 : i32, i32
  }
  func.func @transform_2(%arg0: i32, %arg1: i32) -> (i32, i32) {
    %c0_i32 = arith.constant 0 : i32
    %c0_i32_0 = arith.constant 0 : i32
    %c0_i32_1 = arith.constant 0 : i32
    return %c0_i32, %c0_i32_0 : i32, i32
  }
  func.func @transform_3(%arg0: i32, %arg1: i32) -> (i32, i32) {
    %c0_i32 = arith.constant 0 : i32
    %c0_i32_0 = arith.constant 0 : i32
    return %arg0, %c0_i32 : i32, i32
  }
}

</mosaic_0001>

<bundles_post_ra>
// kernel: tpu_custom_call.1
= control target key start
LH: loop header
LB: loop body
LE: loop exit
PB: predicated region body
PF: predicated region fallthrough
CT: control target
= control target key end

     0   :  { %8 = vsyncpa [#allocation4], 0  ;;  %s320_s0 = inlined_call_operand.hbm [shape: f32[16,16], index: 0, kind: input, shape index: {}]   ;;  %s321_s1 = inlined_call_operand.hbm [shape: f32[16,128], index: 1, kind: input, shape index: {}]   ;;  %s322_s2 = inlined_call_operand.vmem [shape: f32[1,128], index: 2, kind: input, shape index: {}]   ;;  %s323_s3 = inlined_call_operand.hbm [shape: f32[16,128], index: 3, kind: output, shape index: {}]  }
   0x1   :  { %9 = vsyncpa [#allocation7], 0 }
   0x2   :  { %10 = vsyncpa [#allocation5], 0  ;;  %s274_s12 = smov [#allocation3]  }
   0x3   :  { %s16_s13 = sshll.u32 %s274_s12, 4  ;;  %s17_s13 = int_to_ptr.vmem [resolvable:$true] %s16_s13 }
   0x4   :  { %s216_s14 = scalar_lea.vmem %s17_s13, 256  ;;  %p221_p1 = scmp.lt.s32.totalorder %s17_s13, %s17_s13 }
   0x5   :  { %p217_p0 = scmp.ne.s32.totalorder %s17_s13, %s216_s14  ;;  %p222_p2 = scmp.lt.s32.totalorder %s216_s14, %s216_s14 }
   0x7   :  { %p223_p3 = por %p222_p2, %p221_p1 }
   0x9   :  { %p224_p4 = pnand %p223_p3, %p217_p0 }
   0xb   :  { %227 = shalt.err (!%p224_p4)
}
   0xc   :  { %s275_s15 = smov 128   ;;  %s276_s16 = smov 8  }
   0xd   :  { %22 = dma.hbm_to_vmem [thread:$0]  %s320_s0, 256, %s17_s13, [#allocation4], %s275_s15, %s275_s15, %s276_s16  }
   0xe   :  { %s277_s19 = smov [#allocation6]  }
   0xf   :  { %s28_s20 = sshll.u32 %s277_s19, 4  ;;  %s29_s20 = int_to_ptr.vmem [resolvable:$true] %s28_s20 }
  0x10   :  { %s236_s21 = scalar_lea.vmem %s29_s20, 256  ;;  %p241_p6 = scmp.lt.s32.totalorder %s29_s20, %s29_s20 }
  0x11   :  { %p237_p5 = scmp.ne.s32.totalorder %s29_s20, %s236_s21  ;;  %p242_p7 = scmp.lt.s32.totalorder %s236_s21, %s236_s21 }
  0x13   :  { %p243_p8 = por %p242_p7, %p241_p6 }
  0x15   :  { %p244_p9 = pnand %p243_p8, %p237_p5 }
  0x17   :  { %247 = shalt.err (!%p244_p9)
}
  0x18   :  { %34 = dma.hbm_to_vmem [thread:$0]  %s321_s1, 256, %s29_s20, [#allocation7], %s275_s15, %s275_s15, %s276_s16  }
  0x19   :  { %268 = dma.done.wait [#allocation4], 256  }
  0x1a   :  { %269 = vsyncadd [#allocation4], 4294967040 }
  0x1b   :  { %270 = dma.done.wait [#allocation7], 256  }
  0x1c   :  { %271 = vsyncadd [#allocation7], 4294967040  ;;  %vm55_vm0 = vcmask 130048   ;;  %v54_v0 = vld [vmem:[#allocation6 + $0x8] sm:$0xff]  ;;  %v53_v1 = vld [vmem:[#allocation6] sm:$0xff]  ;;  %s278_s1 = smov [#allocation8]  }
  0x1d   :  { %v51_v2 = vld [vmem:[#allocation3] sm:$0xff]  ;;  %192 = vmatprep.subr.mxu0 %v54_v0  ;;  %v52_v3 = vld [vmem:[#allocation3 + $0x8] sm:$0xff]  ;;  %s172_s25 = sshll.u32 %s278_s1, 4  ;;  %s173_s25 = int_to_ptr.vmem [resolvable:$true] %s172_s25 }
  0x1e   :  { %196 = vmatprep.mubr.msk.f32.mxu0 %vm55_vm0, %v51_v2  ;;  %193 = vmatpush3.msra.mxu0 %v54_v0  ;;  %v187_v4 = vld [vmem:[%s322_s2] ss:$0 sm:$0xff]  ;;  %s248_s2 = scalar_lea.vmem %s173_s25, 256  ;;  %p253_p11 = scmp.lt.s32.totalorder %s173_s25, %s173_s25 }
  0x1f   :  { %194 = vmatprep.subr.mxu0 %v53_v1  ;;  %p249_p10 = scmp.ne.s32.totalorder %s173_s25, %s248_s2  ;;  %p254_p12 = scmp.lt.s32.totalorder %s248_s2, %s248_s2 }
  0x20   :  { %195 = vmatpush3.msra.mxu0 %v53_v1 }
  0x21   :  { %197 = vmatmul.mubr.msk.f32.vlgmr.msra.gmra.mxu0 %vm55_vm0, %v52_v3  ;;  %p255_p13 = por %p254_p12, %p253_p11 }
  0x23   :  { %p256_p0 = pnand %p255_p13, %p249_p10 }
  0xe1   :  { %v198_v5 = vpop.f32.mrf.mxu0 }
  0xe2   :  { %v154_v6 = vadd.f32 %v198_v5, %v187_v4 }
  0xe3   :  { %v128_v7 = vpop.f32.mrf.mxu0 }
  0xe4   :  { %v158_v8 = vmul.f32 0.70710677, %v154_v6  ;;  %v153_v9 = vadd.f32 %v187_v4, %v128_v7  ;;  %v156_v12 = vmul.f32 0.5, %v154_v6 }
  0xe6   :  { %204 = verf.f32 %v158_v8  ;;  %v157_v10 = vmul.f32 0.70710677, %v153_v9  ;;  %v155_v16 = vmul.f32 0.5, %v153_v9 }
  0xe8   :  { %206 = verf.f32 %v157_v10 }
  0xf3   :  { %v205_v11 = vpop.eup %204 }
  0xf4   :  { %v162_v13 = vadd.f32 1.0, %v205_v11 }
  0xf5   :  { %v207_v14 = vpop.eup %206 }
  0xf6   :  { %v164_v15 = vmul.f32 %v162_v13, %v156_v12  ;;  %v161_v17 = vadd.f32 1.0, %v207_v14 }
  0xf8   :  { %166 = vst [vmem:[#allocation8 + $0x8] sm:$0xff] %v164_v15  ;;  %v163_v18 = vmul.f32 %v161_v17, %v155_v16 }
  0xfa   :  { %165 = vst [vmem:[#allocation8] sm:$0xff] %v163_v18 }
  0xfb   :  { %259 = shalt.err (!%p256_p0)
}
  0xfc   :  { %178 = dma.vmem_to_hbm [thread:$0]  %s173_s25, 256, %s323_s3, [#allocation5], %s275_s15, %s275_s15, %s276_s16  }
  0xfd   :  { %272 = dma.done.wait [#allocation5], 256  }
  0xfe   :  { %273 = vsyncadd [#allocation5], 4294967040 }
  0xff   :  { %182 = vsyncpa [#allocation4], 1 }
 0x100   :  { %183 = vsyncpa [#allocation7], 1 }
 0x101   :  { %184 = vsyncpa [#allocation5], 1 }

</bundles_post_ra>
